<compile_context>
chip_gen: v5e
topology: v5e:2x2
jax: 0.10.0
libtpu: 0.0.40
codegen_flags: <defaults>
</compile_context>

<pallas_src>
import functools

import jax
import jax.numpy as jnp
import numpy as np
from jax import lax
from jax.experimental import pallas as pl
from jax.experimental.pallas import tpu as pltpu

_TB_MAX = 1024                           # hard cap on batch-tile rows
_VMEM_BUDGET_BYTES = 12 * 1024 * 1024    # conservative working-set budget
_WORKSET_BYTES_PER_ELEM = 32             # 2 dbl-buffered streams + ~4 f32 temps


def _round_up8(n):
    return -(-n // 8) * 8


def _pick_tb(batch, num_classes, block_b):
    """Choose a batch-tile size that is a multiple of 8 (or == batch)."""
    if block_b is not None:
        tb = min(int(block_b), batch)
        if tb < batch:
            tb = max(8, (tb // 8) * 8)    # enforce (8,128) second-minor rule
        return tb
    # VMEM cap: ~32 bytes of live working set per (row, class) element.
    cap = (_VMEM_BUDGET_BYTES // (_WORKSET_BYTES_PER_ELEM * num_classes)) // 8 * 8
    tb = min(_TB_MAX, max(cap, 8))
    if batch >= 32:
        # Prefer >= 4 grid steps: shards across both TensorCores on v7x and
        # lets BlockSpec double-buffering actually overlap DMA with compute.
        tb = min(tb, _round_up8(pl.cdiv(batch, 4)))
    if tb >= batch:
        return batch                      # single full-extent tile is legal
    return tb


def _atloss_kernel(*refs, share, batch_size, block_b):
    if share:
        th_ref, logits_ref, labels_ref, out_ref = refs
    else:
        logits_ref, labels_ref, out_ref = refs

    x = logits_ref[...].astype(jnp.float32)          # [TB, C]
    tb, c = x.shape

    has_remainder = (batch_size % block_b) != 0
    if has_remainder:
        # Only the exp/log inputs need neutralizing; garbage labels on padded
        # rows produce finite per-row losses that are zeroed below.
        row = lax.broadcasted_iota(jnp.int32, (tb, 1), 0) + pl.program_id(0) * block_b
        valid = row < batch_size                     # [TB, 1] bool
        x = jnp.where(valid, x, 0.0)

    # Threshold-column mask: (1, C) lane iota, broadcast against the tile.
    is_th = lax.broadcasted_iota(jnp.int32, (1, c), 1) == 0
    not_th = jnp.logical_not(is_th)

    # Label masks straight off the raw ref (no f32 upcast).  Labels must be a
    # strict {0,1} multi-hot mask (matches the PyTorch module's usage).
    lab_pos = labels_ref[...] > 0                    # [TB, C] bool
    keep_pos = jnp.logical_and(lab_pos, not_th)      # positive classes, col 0 excluded

    # ---- single fused exp pass feeding both log-sum-exps -------------------
    if share:
        # Column 0 is replaced by the shared max/min thresholds: keep it out
        # of the row max and the exp-sums, then add [TB,1] corrections.
        m = jnp.max(jnp.where(is_th, -jnp.inf, x), axis=-1, keepdims=True)
        m = jnp.maximum(m, th_ref[0])                # max_th >= min_th
        e = jnp.exp(x - m)                           # the one big EUP pass
        keep1 = keep_pos
        keep2 = jnp.logical_and(jnp.logical_not(lab_pos), not_th)
        sum1 = (jnp.sum(jnp.where(keep1, e, 0.0), axis=-1, keepdims=True)
                + jnp.exp(th_ref[0] - m))
        sum2 = (jnp.sum(jnp.where(keep2, e, 0.0), axis=-1, keepdims=True)
                + jnp.exp(th_ref[1] - m))
        neg0 = th_ref[1]
    else:
        m = jnp.max(x, axis=-1, keepdims=True)
        e = jnp.exp(x - m)
        keep1 = jnp.logical_or(lab_pos, is_th)       # labels + th_label > 0
        keep2 = jnp.logical_or(jnp.logical_not(lab_pos), is_th)   # 1 - labels > 0
        sum1 = jnp.sum(jnp.where(keep1, e, 0.0), axis=-1, keepdims=True)
        sum2 = jnp.sum(jnp.where(keep2, e, 0.0), axis=-1, keepdims=True)
        neg0 = x[:, 0:1]

    # Guard: if a branch's kept terms all underflow under the shared row max,
    # clamp instead of log(0) (bounded deviation from the exact masked lse).
    tiny = jnp.float32(jnp.finfo(jnp.float32).tiny)
    lse1 = m + jnp.log(jnp.maximum(sum1, tiny))      # [TB, 1]
    lse2 = m + jnp.log(jnp.maximum(sum2, tiny))      # [TB, 1]

    # loss1 = -sum_j labels_j * log_softmax(logit1)_j   (labels are {0,1})
    loss1 = -jnp.sum(jnp.where(keep_pos, x - lse1, 0.0), axis=-1, keepdims=True)
    # loss2 = -log_softmax(logit2)[:, 0]
    loss2 = lse2 - neg0                              # [TB, 1]

    per_row = loss1 + loss2
    if has_remainder:
        per_row = jnp.where(valid, per_row, 0.0)

    # Lane-dense (1, 8, 128) write-back of this tile's partial sum.
    out_ref[...] = jnp.broadcast_to(jnp.sum(per_row), out_ref.shape)


def at_loss(logits, labels, share_threshold=False, block_b=None):
    """Pallas implementation of ATLoss.forward.

    labels must be a {0,1} multi-hot mask (any dtype).  block_b, if given,
    is rounded down to a multiple of 8 (unless >= B).
    """
    B, C = logits.shape
    # Do NOT pay an HBM pass casting labels: the kernel compares the raw ref.
    # bool -> int8 is the only widening applied (byte-width preserving).
    if labels.dtype == jnp.bool_:
        labels = labels.astype(jnp.int8)

    tb = _pick_tb(B, C, block_b)
    num_tiles = pl.cdiv(B, tb)

    kernel = functools.partial(
        _atloss_kernel, share=bool(share_threshold), batch_size=B, block_b=tb)

    in_specs = [
        pl.BlockSpec((tb, C), lambda i: (i, 0)),     # logits (single stream)
        pl.BlockSpec((tb, C), lambda i: (i, 0)),     # labels (native dtype)
    ]
    operands = [logits, labels]

    if share_threshold:
        # The batch-axis softmax over the threshold column crosses batch
        # tiles, so this tiny [B]-length reduction stays in JAX glue; only 2
        # scalars enter SMEM.  Perf note (v5e): logits[:, 0] is a strided
        # column read; upstream can keep a contiguous copy of that column.
        th = logits[:, 0].astype(jnp.float32)
        max_th = jnp.sum(jax.nn.softmax(th, axis=0) * th)
        min_th = jnp.sum(jax.nn.softmax(-th, axis=0) * th)
        th_scalars = jnp.stack([max_th, min_th]).astype(jnp.float32)   # (2,)
        in_specs = [pl.BlockSpec(memory_space=pltpu.MemorySpace.SMEM)] + in_specs
        operands = [th_scalars] + operands

    partials = pl.pallas_call(
        kernel,
        out_shape=jax.ShapeDtypeStruct((num_tiles, 8, 128), jnp.float32),
        grid_spec=pltpu.PrefetchScalarGridSpec(
            num_scalar_prefetch=0,
            grid=(num_tiles,),
            in_specs=in_specs,
            out_specs=pl.BlockSpec((1, 8, 128), lambda i: (i, 0, 0)),
        ),
        compiler_params=pltpu.CompilerParams(
            dimension_semantics=("parallel",),
            vmem_limit_bytes=32 * 1024 * 1024),
    )(*operands)

    # Cross-tile reduction + mean in plain JAX (keeps the grid axis parallel).
    return jnp.sum(partials[:, 0, 0]) / B


def _at_loss_ref(logits, labels, share_threshold=False):
    """Pure-JAX reference mirroring the PyTorch forward, for verification."""
    logits = logits.astype(jnp.float32)
    labels = labels.astype(jnp.float32)
    B, C = logits.shape
    th_label = jnp.zeros_like(labels).at[:, 0].set(1.0)
    labels = labels.at[:, 0].set(0.0)
    p_mask = labels + th_label
    n_mask = 1.0 - labels
    if share_threshold:
        th = logits[:, 0]
        max_th = jnp.sum(jax.nn.softmax(th, axis=0) * th)
        min_th = jnp.sum(jax.nn.softmax(-th, axis=0) * th)
        pos = jnp.concatenate([jnp.full((B, 1), max_th), logits[:, 1:]], axis=-1)
        neg = jnp.concatenate([jnp.full((B, 1), min_th), logits[:, 1:]], axis=-1)
    else:
        pos = logits
        neg = logits
    logit1 = pos - (1.0 - p_mask) * 1e30
    loss1 = -jnp.sum(jax.nn.log_softmax(logit1, axis=-1) * labels, axis=1)
    logit2 = neg - (1.0 - n_mask) * 1e30
    loss2 = -jnp.sum(jax.nn.log_softmax(logit2, axis=-1) * th_label, axis=1)
    return jnp.mean(loss1 + loss2)


if __name__ == "__main__":
    key = jax.random.PRNGKey(0)

    # --- Small single-tile case: B=8 entity pairs x (1 threshold + 31 rels).
    B, C = 8, 32
    k1, k2, k3, k4, k5, k6 = jax.random.split(key, 6)
    logits = jax.random.normal(k1, (B, C), dtype=jnp.float32)
    labels = (jax.random.uniform(k2, (B, C)) < 0.08).astype(jnp.float32)
    labels = labels.at[:, 0].set(0.0)

    loss = at_loss(logits, labels, share_threshold=False)
    jax.block_until_ready(loss)
    np.testing.assert_allclose(
        np.asarray(loss), np.asarray(_at_loss_ref(logits, labels, False)),
        rtol=1e-5, atol=1e-5)

    loss_sh = at_loss(logits, labels, share_threshold=True)
    jax.block_until_ready(loss_sh)
    np.testing.assert_allclose(
        np.asarray(loss_sh), np.asarray(_at_loss_ref(logits, labels, True)),
        rtol=1e-5, atol=1e-5)

    # --- Multi-tile case with a partial last tile (B=20, TB=8): exercises the
    #     remainder-tile masking path + cross-tile reduction.
    B2 = 20
    logits2 = jax.random.normal(k3, (B2, C), dtype=jnp.float32)
    labels2 = (jax.random.uniform(k4, (B2, C)) < 0.08).astype(jnp.float32)
    labels2 = labels2.at[:, 0].set(0.0)

    loss_t = at_loss(logits2, labels2, share_threshold=False, block_b=8)
    jax.block_until_ready(loss_t)
    np.testing.assert_allclose(
        np.asarray(loss_t), np.asarray(_at_loss_ref(logits2, labels2, False)),
        rtol=1e-5, atol=1e-5)

    loss_t_sh = at_loss(logits2, labels2, share_threshold=True, block_b=8)
    jax.block_until_ready(loss_t_sh)
    np.testing.assert_allclose(
        np.asarray(loss_t_sh), np.asarray(_at_loss_ref(logits2, labels2, True)),
        rtol=1e-5, atol=1e-5)

    # --- Aligned multi-tile case with auto TB (B=64 -> TB=16, 4 parallel
    #     tiles, no remainder masking) and bool labels (no HBM cast pass).
    B3 = 64
    logits3 = jax.random.normal(k5, (B3, C), dtype=jnp.float32)
    labels3_f = (jax.random.uniform(k6, (B3, C)) < 0.08).astype(jnp.float32)
    labels3_f = labels3_f.at[:, 0].set(0.0)
    labels3_b = labels3_f.astype(jnp.bool_)

    loss_a = at_loss(logits3, labels3_b, share_threshold=False)
    jax.block_until_ready(loss_a)
    np.testing.assert_allclose(
        np.asarray(loss_a), np.asarray(_at_loss_ref(logits3, labels3_f, False)),
        rtol=1e-5, atol=1e-5)

    loss_a_sh = at_loss(logits3, labels3_b, share_threshold=True)
    jax.block_until_ready(loss_a_sh)
    np.testing.assert_allclose(
        np.asarray(loss_a_sh), np.asarray(_at_loss_ref(logits3, labels3_f, True)),
        rtol=1e-5, atol=1e-5)

    print("KERNEL_OK")
</pallas_src>

<mosaic_0001>
module attributes {stable_mosaic.version = 11 : i64} {
  func.func @_atloss_kernel(%arg0: i32, %arg1: memref<8x32xf32, #tpu.memory_space<vmem>>, %arg2: memref<8x32xf32, #tpu.memory_space<vmem>>, %arg3: memref<1x8x128xf32, #tpu.memory_space<vmem>>) attributes {dimension_semantics = [#tpu.dimension_semantics<parallel>], iteration_bounds = array<i64: 1>, scalar_prefetch = 0 : i64, scratch_operands = 0 : i64, tpu.core_type = #tpu.core_type<tc>, window_params = [{transform_indices = @transform_0, window_bounds = array<i64: 8, 32>}, {transform_indices = @transform_1, window_bounds = array<i64: 8, 32>}, {transform_indices = @transform_2, window_bounds = array<i64: 1, 8, 128>}]} {
    %c0 = arith.constant 0 : index
    %c0_0 = arith.constant 0 : index
    %0 = vector.load %arg1[%c0, %c0_0] : memref<8x32xf32, #tpu.memory_space<vmem>>, vector<8x32xf32>
    %1 = tpu.iota {dimensions = array<i32: 1>} : vector<1x32xi32>
    %c0_i32 = arith.constant 0 : i32
    %2 = vector.broadcast %c0_i32 : i32 to vector<1x32xi32>
    %3 = arith.cmpi eq, %1, %2 : vector<1x32xi32>
    %cst = arith.constant dense<true> : vector<1x32xi1>
    %4 = arith.xori %3, %cst : vector<1x32xi1>
    %c0_1 = arith.constant 0 : index
    %c0_2 = arith.constant 0 : index
    %5 = vector.load %arg2[%c0_1, %c0_2] : memref<8x32xf32, #tpu.memory_space<vmem>>, vector<8x32xf32>
    %cst_3 = arith.constant 0.000000e+00 : f32
    %6 = vector.broadcast %cst_3 : f32 to vector<8x32xf32>
    %7 = arith.cmpf ogt, %5, %6 : vector<8x32xf32>
    %8 = vector.broadcast %4 : vector<1x32xi1> to vector<8x32xi1>
    %9 = arith.andi %7, %8 : vector<8x32xi1>
    %cst_4 = arith.constant dense<0xFF800000> : vector<8xf32>
    %10 = vector.multi_reduction <maximumf>, %0, %cst_4 [1] : vector<8x32xf32> to vector<8xf32>
    %11 = vector.shape_cast %10 : vector<8xf32> to vector<8x1xf32>
    %12 = vector.broadcast %11 : vector<8x1xf32> to vector<8x32xf32>
    %13 = arith.subf %0, %12 : vector<8x32xf32>
    %14 = math.exp %13 : vector<8x32xf32>
    %15 = vector.broadcast %3 : vector<1x32xi1> to vector<8x32xi1>
    %16 = arith.ori %7, %15 : vector<8x32xi1>
    %cst_5 = arith.constant dense<true> : vector<8x32xi1>
    %17 = arith.xori %7, %cst_5 : vector<8x32xi1>
    %18 = vector.broadcast %3 : vector<1x32xi1> to vector<8x32xi1>
    %19 = arith.ori %17, %18 : vector<8x32xi1>
    %cst_6 = arith.constant 0.000000e+00 : f32
    %20 = vector.broadcast %cst_6 : f32 to vector<8x32xf32>
    %21 = arith.select %16, %14, %20 : vector<8x32xi1>, vector<8x32xf32>
    %cst_7 = arith.constant dense<0.000000e+00> : vector<8xf32>
    %22 = vector.multi_reduction <add>, %21, %cst_7 [1] : vector<8x32xf32> to vector<8xf32>
    %23 = vector.shape_cast %22 : vector<8xf32> to vector<8x1xf32>
    %cst_8 = arith.constant 0.000000e+00 : f32
    %24 = vector.broadcast %cst_8 : f32 to vector<8x32xf32>
    %25 = arith.select %19, %14, %24 : vector<8x32xi1>, vector<8x32xf32>
    %cst_9 = arith.constant dense<0.000000e+00> : vector<8xf32>
    %26 = vector.multi_reduction <add>, %25, %cst_9 [1] : vector<8x32xf32> to vector<8xf32>
    %27 = vector.shape_cast %26 : vector<8xf32> to vector<8x1xf32>
    %28 = vector.extract_strided_slice %0 {offsets = [0, 0], sizes = [8, 1], strides = [1, 1]} : vector<8x32xf32> to vector<8x1xf32>
    %cst_10 = arith.constant 1.17549435E-38 : f32
    %29 = vector.broadcast %cst_10 : f32 to vector<8x1xf32>
    %30 = arith.maximumf %23, %29 : vector<8x1xf32>
    %31 = math.log %30 : vector<8x1xf32>
    %32 = arith.addf %11, %31 : vector<8x1xf32>
    %cst_11 = arith.constant 1.17549435E-38 : f32
    %33 = vector.broadcast %cst_11 : f32 to vector<8x1xf32>
    %34 = arith.maximumf %27, %33 : vector<8x1xf32>
    %35 = math.log %34 : vector<8x1xf32>
    %36 = arith.addf %11, %35 : vector<8x1xf32>
    %37 = vector.broadcast %32 : vector<8x1xf32> to vector<8x32xf32>
    %38 = arith.subf %0, %37 : vector<8x32xf32>
    %cst_12 = arith.constant 0.000000e+00 : f32
    %39 = vector.broadcast %cst_12 : f32 to vector<8x32xf32>
    %40 = arith.select %9, %38, %39 : vector<8x32xi1>, vector<8x32xf32>
    %cst_13 = arith.constant dense<0.000000e+00> : vector<8xf32>
    %41 = vector.multi_reduction <add>, %40, %cst_13 [1] : vector<8x32xf32> to vector<8xf32>
    %42 = vector.shape_cast %41 : vector<8xf32> to vector<8x1xf32>
    %cst_14 = arith.constant 0.000000e+00 : f32
    %43 = vector.broadcast %cst_14 : f32 to vector<8x1xf32>
    %44 = arith.subf %43, %42 : vector<8x1xf32>
    %45 = arith.subf %36, %28 : vector<8x1xf32>
    %46 = arith.addf %44, %45 : vector<8x1xf32>
    %47 = vector.shape_cast %46 : vector<8x1xf32> to vector<1x8x1xf32>
    %cst_15 = arith.constant dense<0.000000e+00> : vector<1xf32>
    %48 = vector.multi_reduction <add>, %47, %cst_15 [1, 2] : vector<1x8x1xf32> to vector<1xf32>
    %49 = vector.shape_cast %48 : vector<1xf32> to vector<1x1x1xf32>
    %50 = vector.extract %49[0, 0, 0] : f32 from vector<1x1x1xf32>
    %51 = vector.broadcast %50 : f32 to vector<1x8x128xf32>
    %c0_16 = arith.constant 0 : index
    %c0_17 = arith.constant 0 : index
    %c0_18 = arith.constant 0 : index
    %52 = vector.load %arg3[%c0_16, %c0_17, %c0_18] : memref<1x8x128xf32, #tpu.memory_space<vmem>>, vector<1x8x128xf32>
    tpu.vector_store %arg3[%c0_16, %c0_17, %c0_18], %51 {strides = array<i32>} : memref<1x8x128xf32, #tpu.memory_space<vmem>>, vector<1x8x128xf32>,
    return
  }
  func.func @transform_0(%arg0: i32) -> (i32, i32) {
    %c0_i32 = arith.constant 0 : i32
    %c0_i32_0 = arith.constant 0 : i32
    return %arg0, %c0_i32 : i32, i32
  }
  func.func @transform_1(%arg0: i32) -> (i32, i32) {
    %c0_i32 = arith.constant 0 : i32
    %c0_i32_0 = arith.constant 0 : i32
    return %arg0, %c0_i32 : i32, i32
  }
  func.func @transform_2(%arg0: i32) -> (i32, i32, i32) {
    %c0_i32 = arith.constant 0 : i32
    %c0_i32_0 = arith.constant 0 : i32
    %c0_i32_1 = arith.constant 0 : i32
    return %arg0, %c0_i32, %c0_i32_0 : i32, i32, i32
  }
}

</mosaic_0001>

<bundles_post_ra>
// kernel: tpu_custom_call.1
= control target key start
LH: loop header
LB: loop body
LE: loop exit
PB: predicated region body
PF: predicated region fallthrough
CT: control target
= control target key end

     0   :  { %7 = vsyncpa [#allocation3], 0  ;;  %s247_s0 = inlined_call_operand.hbm [shape: f32[8,32], index: 0, kind: input, shape index: {}]   ;;  %s248_s1 = inlined_call_operand.hbm [shape: f32[8,32], index: 1, kind: input, shape index: {}]   ;;  %s249_s2 = inlined_call_operand.hbm [shape: f32[1,8,128], index: 2, kind: output, shape index: {}]  }
   0x1   :  { %8 = vsyncpa [#allocation6], 0 }
   0x2   :  { %9 = vsyncpa [#allocation4], 0  ;;  %s15_s11 = sshll.u32 %s247_s0, 4  ;;  %s207_s12 = smov [#allocation2]   ;;  %s16_s11 = int_to_ptr.hbm [resolvable:$true] %s15_s11 }
   0x3   :  { %s17_s13 = sshll.u32 %s207_s12, 4  ;;  %s26_s16 = sshll.u32 %s248_s1, 4  ;;  %s18_s13 = int_to_ptr.vmem [resolvable:$true] %s17_s13  ;;  %s27_s16 = int_to_ptr.hbm [resolvable:$true] %s26_s16 }
   0x4   :  { %20 = dma.hbm_to_vmem [thread:$0]  %s16_s11, 128, %s18_s13, [#allocation3]  }
   0x5   :  { %s208_s17 = smov [#allocation5]  }
   0x6   :  { %s28_s18 = sshll.u32 %s208_s17, 4  ;;  %s29_s18 = int_to_ptr.vmem [resolvable:$true] %s28_s18 }
   0x7   :  { %31 = dma.hbm_to_vmem [thread:$0]  %s27_s16, 128, %s29_s18, [#allocation6]  }
   0x8   :  { %201 = dma.done.wait [#allocation3], 128  }
   0x9   :  { %202 = vsyncadd [#allocation3], 4294967168 }
   0xa   :  { %203 = dma.done.wait [#allocation6], 128  }
   0xb   :  { %204 = vsyncadd [#allocation6], 4294967168  ;;  %vm50_vm0 = vcmask 261120   ;;  %v40_v0 = vld [vmem:[#allocation2] sm:$0xff]  ;;  %v41_v2 = vlaneseq  ;;  %v45_v3 = vld [vmem:[#allocation5] sm:$0xff]  ;;  %vm209_vm3 = vmmov 1  }
   0xc   :  { %v51_v1 = vsel %vm50_vm0, %v40_v0, -inf  ;;  %vm46_vm1 = vcmp.gt.f32.partialorder %v45_v3, 0.0  ;;  %vm86_vm9 = vcmask 7168   ;;  %s210_s0 = smov [#allocation7]   ;;  %s106_s21 = sshll.u32 %s249_s2, 4  ;;  %s107_s21 = int_to_ptr.hbm [resolvable:$true] %s106_s21 }
   0xd   :  { %52 = vmax.xlane.f32.xlu0 %v51_v1  ;;  %v42_v6 = vand.u32 127, %v41_v2  ;;  %vm60_vm4 = vmxor %vm46_vm1, %vm209_vm3  ;;  %s104_s1 = sshll.u32 %s210_s0, 4  ;;  %s105_s1 = int_to_ptr.vmem [resolvable:$true] %s104_s1 }
   0xf   :  { %vm43_vm2 = vcmp.eq.s32.totalorder %v42_v6, 0 }
  0x10   :  { %vm61_vm5 = vmor %vm60_vm4, %vm43_vm2 }
  0x11   :  { %vm59_vm6 = vmor %vm46_vm1, %vm43_vm2 }
  0x12   :  { %vm44_vm7 = vmxor %vm43_vm2, %vm209_vm3 }
  0x13   :  { %vm49_vm8 = vmand %vm46_vm1, %vm44_vm7 }
  0x80   :  { %v53_v4 = vpop.xlane.xlu0 %52 }
  0x81   :  { %v54_v5 = vsub.f32 %v40_v0, %v53_v4 }
  0x83   :  { %v55_v7 = vmul.f32 1.442695, %v54_v5 }
  0x85   :  { %123 = vpow2.f32 %v55_v7 }
  0x8b   :  { %v124_v8 = vpop.eup %123 }
  0x8c   :  { %v66_v9 = vsel %vm61_vm5, %v124_v8, 0.0  ;;  %v62_v10 = vsel %vm59_vm6, %v124_v8, 0.0 }
  0x8d   :  { %v67_v11 = vsel %vm50_vm0, %v66_v9, 0.0  ;;  %v63_v12 = vsel %vm50_vm0, %v62_v10, 0.0 }
  0x8e   :  { %68 = vadd.xlane.f32.xlu1 %v67_v11  ;;  %64 = vadd.xlane.f32.xlu0 %v63_v12 }
 0x101   :  { %v65_v13 = vpop.xlane.xlu0 %64  ;;  %v69_v21 = vpop.xlane.xlu1 %68 }
 0x102   :  { %v70_v14 = vmax.f32 %v65_v13, 1.1754944e-38  ;;  %v74_v22 = vmax.f32 %v69_v21, 1.1754944e-38 }
 0x104   :  { %125 = vlog2.f32 %v70_v14 }
 0x105   :  { %127 = vlog2.f32 %v74_v22 }
 0x10a   :  { %v126_v15 = vpop.eup %125 }
 0x10b   :  { %v72_v16 = vmul.f32 0.6931472, %v126_v15  ;;  %v128_v23 = vpop.eup %127 }
 0x10c   :  { %v76_v24 = vmul.f32 0.6931472, %v128_v23 }
 0x10d   :  { %v73_v17 = vadd.f32 %v72_v16, %v53_v4 }
 0x10e   :  { %v77_v25 = vadd.f32 %v76_v24, %v53_v4 }
 0x10f   :  { %v78_v18 = vsub.f32 %v40_v0, %v73_v17 }
 0x110   :  { %v84_v28 = vsub.f32 %v77_v25, %v40_v0 }
 0x111   :  { %v79_v19 = vsel %vm49_vm8, %v78_v18, 0.0 }
 0x112   :  { %v80_v20 = vsel %vm50_vm0, %v79_v19, 0.0 }
 0x113   :  { %81 = vadd.xlane.f32.xlu1 %v80_v20 }
 0x186   :  { %v82_v26 = vpop.xlane.xlu1 %81 }
 0x187   :  { %v83_v27 = vsub.f32 0.0, %v82_v26 }
 0x189   :  { %v85_v29 = vadd.f32 %v84_v28, %v83_v27 }
 0x18b   :  { %v87_v30 = vsel %vm86_vm9, %v85_v29, 0.0 }
 0x18c   :  { %88 = vadd.xlane.f32.xlu2 %v87_v30 }
 0x1ff   :  { %v89_v31 = vpop.xlane.xlu2 %88 }
 0x200   :  { %v90_v32 = vrot.slane %v89_v31, 4 }
 0x202   :  { %v91_v33 = vadd.f32 %v90_v32, %v89_v31 }
 0x204   :  { %v92_v34 = vrot.slane %v91_v33, 2 }
 0x206   :  { %v93_v35 = vadd.f32 %v92_v34, %v91_v33 }
 0x208   :  { %v94_v36 = vrot.slane %v93_v35, 1 }
 0x20a   :  { %v95_v37 = vadd.f32 %v94_v36, %v93_v35 }
 0x20c   :  { %117 = vpush %v95_v37 }
 0x23d   :  { %s118_s22 = spop %117 }
 0x23e   :  { %v97_v38 = vstv %s118_s22 }
 0x23f   :  { %98 = vst [vmem:[#allocation7] sm:$0xff] %v97_v38 }
 0x240   :  { %109 = dma.vmem_to_hbm [thread:$0]  %s105_s1, 128, %s107_s21, [#allocation4]  }
 0x241   :  { %205 = dma.done.wait [#allocation4], 128  }
 0x242   :  { %206 = vsyncadd [#allocation4], 4294967168 }
 0x243   :  { %114 = vsyncpa [#allocation3], 1 }
 0x244   :  { %115 = vsyncpa [#allocation6], 1 }
 0x245   :  { %116 = vsyncpa [#allocation4], 1 }

</bundles_post_ra>
